<compile_context>
chip_gen: v5e
topology: v5e:2x2
jax: 0.10.0
libtpu: 0.0.40
codegen_flags: <defaults>
</compile_context>

<pallas_src>
import jax
import jax.numpy as jnp
from jax.experimental import pallas as pl
from jax.experimental.pallas import tpu as pltpu

HIDDEN_DIM = 64
LANE = 128
DEFAULT_TILE_B = 4096


def _round_up(x, m):
    return ((x + m - 1) // m) * m


def _cdiv(a, b):
    return (a + b - 1) // b


def _critic_kernel(s_ref, a_ref, w1s_ref, w1a_ref, b1_ref,
                   w2_ref, b2_ref, w3_ref, b3_ref, out_ref):
    # Batch-on-lanes: every activation is (feature, TILE_B).
    s = s_ref[...].astype(jnp.bfloat16)          # (state_dim,  TILE_B)
    a = a_ref[...].astype(jnp.bfloat16)          # (action_dim, TILE_B)

    # Layer 1: split-W1 (no concat needed) -> (64, TILE_B), f32 accumulation.
    h1 = (jnp.dot(w1s_ref[...].astype(jnp.bfloat16), s,
                  preferred_element_type=jnp.float32)
          + jnp.dot(w1a_ref[...].astype(jnp.bfloat16), a,
                    preferred_element_type=jnp.float32)
          + b1_ref[...])
    h1 = jnp.maximum(h1, 0.0)

    # Layer 2: 64 -> 64 on the MXU (bf16 in, f32 out).
    h2 = jnp.dot(w2_ref[...].astype(jnp.bfloat16), h1.astype(jnp.bfloat16),
                 preferred_element_type=jnp.float32) + b2_ref[...]
    h2 = jnp.maximum(h2, 0.0)

    # Layer 3: (1, 64) @ (64, TILE_B) -> (1, TILE_B): lane-dense output block.
    q = jnp.dot(w3_ref[...].astype(jnp.bfloat16), h2.astype(jnp.bfloat16),
                preferred_element_type=jnp.float32) + b3_ref[...]
    out_ref[...] = q.astype(out_ref.dtype)


def critic_forward(state, action, params, *, tile_b=DEFAULT_TILE_B):
    """state: (B, state_dim) f32, action: (B, action_dim) f32 -> (B, 1) f32."""
    w1s, w1a, b1, w2, b2, w3, b3 = params
    B, state_dim = state.shape
    action_dim = action.shape[1]
    in_dim = state_dim + action_dim

    # Lane-major inputs (cheap one-time transpose; no concat).
    s_t = state.T.astype(jnp.float32)    # (state_dim,  B)
    a_t = action.T.astype(jnp.float32)   # (action_dim, B)

    # Lane-aligned batch tile; guarantee >=2 grid steps when possible so the
    # "parallel" grid axis can be split across v7x TensorCores.
    b_lane = _round_up(B, LANE)
    tile_b = _round_up(max(LANE, min(tile_b, b_lane)), LANE)
    if b_lane >= 2 * LANE and b_lane // tile_b < 2:
        tile_b = _round_up(_cdiv(b_lane, 2), LANE)
    num_tiles = _cdiv(b_lane, tile_b)
    b_pad = num_tiles * tile_b
    if b_pad != B:
        s_t = jnp.pad(s_t, ((0, 0), (0, b_pad - B)))
        a_t = jnp.pad(a_t, ((0, 0), (0, b_pad - B)))

    def const_spec(arr):
        # Weights/biases: same (only) block every grid step -> stay in VMEM.
        nd = arr.ndim
        return pl.BlockSpec(arr.shape, lambda i, _nd=nd: (0,) * _nd)

    flops = 2 * b_pad * (in_dim * HIDDEN_DIM + HIDDEN_DIM * HIDDEN_DIM + HIDDEN_DIM)
    bytes_accessed = 4 * (b_pad * (in_dim + 1)
                          + HIDDEN_DIM * (in_dim + HIDDEN_DIM + 1)
                          + 2 * HIDDEN_DIM + 1)

    out = pl.pallas_call(
        _critic_kernel,
        out_shape=jax.ShapeDtypeStruct((1, b_pad), jnp.float32),
        grid=(num_tiles,),
        in_specs=[
            pl.BlockSpec((state_dim, tile_b), lambda i: (0, i)),
            pl.BlockSpec((action_dim, tile_b), lambda i: (0, i)),
            const_spec(w1s),
            const_spec(w1a),
            const_spec(b1),
            const_spec(w2),
            const_spec(b2),
            const_spec(w3),
            const_spec(b3),
        ],
        out_specs=pl.BlockSpec((1, tile_b), lambda i: (0, i)),
        compiler_params=pltpu.CompilerParams(
            dimension_semantics=("parallel",),   # megacore-shard the batch grid
            vmem_limit_bytes=32 * 1024 * 1024,
        ),
        cost_estimate=pl.CostEstimate(
            flops=flops, transcendentals=0, bytes_accessed=bytes_accessed),
    )(s_t, a_t, w1s, w1a, b1, w2, b2, w3, b3)

    # (1, b_pad) row-major has identical layout to (b_pad, 1); slice to B rows.
    return out.reshape(b_pad, 1)[:B]


def init_critic_params(key, state_dim, action_dim, hidden_dim=HIDDEN_DIM):
    """PyTorch nn.Linear default init (U[-1/sqrt(fan_in), 1/sqrt(fan_in)]).

    Weights are stored in (out, in) layout (PyTorch convention), which is
    exactly what the batch-on-lanes kernel needs.  W1 is pre-split into the
    state and action slabs so the kernel never materializes cat([s, a]).
    """
    def linear_init(k, fan_in, fan_out):
        kw, kb = jax.random.split(k)
        bound = 1.0 / jnp.sqrt(jnp.float32(fan_in))
        w = jax.random.uniform(kw, (fan_out, fan_in), jnp.float32, -bound, bound)
        b = jax.random.uniform(kb, (fan_out, 1), jnp.float32, -bound, bound)
        return w, b

    k1, k2, k3 = jax.random.split(key, 3)
    in_dim = state_dim + action_dim
    w1, b1 = linear_init(k1, in_dim, hidden_dim)
    w2, b2 = linear_init(k2, hidden_dim, hidden_dim)
    w3, b3 = linear_init(k3, hidden_dim, 1)
    w1s = w1[:, :state_dim]
    w1a = w1[:, state_dim:]
    return (w1s, w1a, b1, w2, b2, w3, b3)


def critic_ref(state, action, params):
    """Pure-JAX f32 reference for correctness checking."""
    w1s, w1a, b1, w2, b2, w3, b3 = params
    x = jnp.concatenate([state, action], axis=1)
    w1 = jnp.concatenate([w1s, w1a], axis=1)
    h1 = jnp.maximum(x @ w1.T + b1.T, 0.0)
    h2 = jnp.maximum(h1 @ w2.T + b2.T, 0.0)
    return h2 @ w3.T + b3.T


if __name__ == "__main__":
    state_dim = 12
    action_dim = 4

    key = jax.random.PRNGKey(0)
    k_params, k_state, k_action = jax.random.split(key, 3)
    params = init_critic_params(k_params, state_dim, action_dim)

    # Case 1: tiny batch (single 128-lane tile, one grid step).
    batch = 8
    state = jax.random.normal(k_state, (batch, state_dim), jnp.float32)
    action = jax.random.normal(k_action, (batch, action_dim), jnp.float32)
    q = jax.block_until_ready(critic_forward(state, action, params))
    q_ref = critic_ref(state, action, params)
    assert q.shape == (batch, 1)
    # bf16 MXU inputs with f32 accumulation -> loosened tolerance vs f32 ref.
    assert jnp.allclose(q, q_ref, atol=3e-2, rtol=3e-2), "mismatch vs JAX reference (B=8)"

    # Case 2: ragged batch -> >=2 grid steps (megacore path) + tail padding.
    batch2 = 300
    state2 = jax.random.normal(jax.random.PRNGKey(1), (batch2, state_dim), jnp.float32)
    action2 = jax.random.normal(jax.random.PRNGKey(2), (batch2, action_dim), jnp.float32)
    q2 = jax.block_until_ready(critic_forward(state2, action2, params))
    q2_ref = critic_ref(state2, action2, params)
    assert q2.shape == (batch2, 1)
    assert jnp.allclose(q2, q2_ref, atol=3e-2, rtol=3e-2), "mismatch vs JAX reference (B=300)"

    print("KERNEL_OK")
</pallas_src>

<mosaic_0001>
module attributes {stable_mosaic.version = 11 : i64} {
  func.func @_critic_kernel(%arg0: i32, %arg1: memref<12x128xf32, #tpu.memory_space<vmem>>, %arg2: memref<4x128xf32, #tpu.memory_space<vmem>>, %arg3: memref<64x12xf32, #tpu.memory_space<vmem>>, %arg4: memref<64x4xf32, #tpu.memory_space<vmem>>, %arg5: memref<64x1xf32, #tpu.memory_space<vmem>>, %arg6: memref<64x64xf32, #tpu.memory_space<vmem>>, %arg7: memref<64x1xf32, #tpu.memory_space<vmem>>, %arg8: memref<1x64xf32, #tpu.memory_space<vmem>>, %arg9: memref<1x1xf32, #tpu.memory_space<vmem>>, %arg10: memref<1x128xf32, #tpu.memory_space<vmem>>) attributes {dimension_semantics = [#tpu.dimension_semantics<parallel>], iteration_bounds = array<i64: 1>, scalar_prefetch = 0 : i64, scratch_operands = 0 : i64, tpu.core_type = #tpu.core_type<tc>, window_params = [{transform_indices = @transform_0, window_bounds = array<i64: 12, 128>}, {transform_indices = @transform_1, window_bounds = array<i64: 4, 128>}, {pipeline_mode = #tpu.pipeline_mode<synchronous>, transform_indices = @transform_2, window_bounds = array<i64: 64, 12>}, {pipeline_mode = #tpu.pipeline_mode<synchronous>, transform_indices = @transform_3, window_bounds = array<i64: 64, 4>}, {pipeline_mode = #tpu.pipeline_mode<synchronous>, transform_indices = @transform_4, window_bounds = array<i64: 64, 1>}, {pipeline_mode = #tpu.pipeline_mode<synchronous>, transform_indices = @transform_5, window_bounds = array<i64: 64, 64>}, {pipeline_mode = #tpu.pipeline_mode<synchronous>, transform_indices = @transform_6, window_bounds = array<i64: 64, 1>}, {pipeline_mode = #tpu.pipeline_mode<synchronous>, transform_indices = @transform_7, window_bounds = array<i64: 1, 64>}, {pipeline_mode = #tpu.pipeline_mode<synchronous>, transform_indices = @transform_8, window_bounds = array<i64: 1, 1>}, {transform_indices = @transform_9, window_bounds = array<i64: 1, 128>}]} {
    %c0 = arith.constant 0 : index
    %c0_0 = arith.constant 0 : index
    %0 = vector.load %arg1[%c0, %c0_0] : memref<12x128xf32, #tpu.memory_space<vmem>>, vector<12x128xf32>
    %1 = arith.truncf %0 : vector<12x128xf32> to vector<12x128xbf16>
    %c0_1 = arith.constant 0 : index
    %c0_2 = arith.constant 0 : index
    %2 = vector.load %arg2[%c0_1, %c0_2] : memref<4x128xf32, #tpu.memory_space<vmem>>, vector<4x128xf32>
    %3 = arith.truncf %2 : vector<4x128xf32> to vector<4x128xbf16>
    %c0_3 = arith.constant 0 : index
    %c0_4 = arith.constant 0 : index
    %4 = vector.load %arg3[%c0_3, %c0_4] : memref<64x12xf32, #tpu.memory_space<vmem>>, vector<64x12xf32>
    %5 = arith.truncf %4 : vector<64x12xf32> to vector<64x12xbf16>
    %cst = arith.constant dense<0.000000e+00> : vector<64x128xf32>
    %6 = tpu.matmul %5, %1, %cst {dimension_numbers = #tpu.dot_dimension_numbers<[1], [0], [0], [1], [0, 0, 1, 1], [], []>} : vector<64x12xbf16>, vector<12x128xbf16>, vector<64x128xf32> -> vector<64x128xf32>
    %c0_5 = arith.constant 0 : index
    %c0_6 = arith.constant 0 : index
    %7 = vector.load %arg4[%c0_5, %c0_6] : memref<64x4xf32, #tpu.memory_space<vmem>>, vector<64x4xf32>
    %8 = arith.truncf %7 : vector<64x4xf32> to vector<64x4xbf16>
    %cst_7 = arith.constant dense<0.000000e+00> : vector<64x128xf32>
    %9 = tpu.matmul %8, %3, %cst_7 {dimension_numbers = #tpu.dot_dimension_numbers<[1], [0], [0], [1], [0, 0, 1, 1], [], []>} : vector<64x4xbf16>, vector<4x128xbf16>, vector<64x128xf32> -> vector<64x128xf32>
    %10 = arith.addf %6, %9 : vector<64x128xf32>
    %c0_8 = arith.constant 0 : index
    %c0_9 = arith.constant 0 : index
    %11 = vector.load %arg5[%c0_8, %c0_9] : memref<64x1xf32, #tpu.memory_space<vmem>>, vector<64x1xf32>
    %12 = vector.broadcast %11 : vector<64x1xf32> to vector<64x128xf32>
    %13 = arith.addf %10, %12 : vector<64x128xf32>
    %cst_10 = arith.constant 0.000000e+00 : f32
    %14 = vector.broadcast %cst_10 : f32 to vector<64x128xf32>
    %15 = arith.maximumf %13, %14 : vector<64x128xf32>
    %c0_11 = arith.constant 0 : index
    %c0_12 = arith.constant 0 : index
    %16 = vector.load %arg6[%c0_11, %c0_12] : memref<64x64xf32, #tpu.memory_space<vmem>>, vector<64x64xf32>
    %17 = arith.truncf %16 : vector<64x64xf32> to vector<64x64xbf16>
    %18 = arith.truncf %15 : vector<64x128xf32> to vector<64x128xbf16>
    %cst_13 = arith.constant dense<0.000000e+00> : vector<64x128xf32>
    %19 = tpu.matmul %17, %18, %cst_13 {dimension_numbers = #tpu.dot_dimension_numbers<[1], [0], [0], [1], [0, 0, 1, 1], [], []>} : vector<64x64xbf16>, vector<64x128xbf16>, vector<64x128xf32> -> vector<64x128xf32>
    %c0_14 = arith.constant 0 : index
    %c0_15 = arith.constant 0 : index
    %20 = vector.load %arg7[%c0_14, %c0_15] : memref<64x1xf32, #tpu.memory_space<vmem>>, vector<64x1xf32>
    %21 = vector.broadcast %20 : vector<64x1xf32> to vector<64x128xf32>
    %22 = arith.addf %19, %21 : vector<64x128xf32>
    %cst_16 = arith.constant 0.000000e+00 : f32
    %23 = vector.broadcast %cst_16 : f32 to vector<64x128xf32>
    %24 = arith.maximumf %22, %23 : vector<64x128xf32>
    %c0_17 = arith.constant 0 : index
    %c0_18 = arith.constant 0 : index
    %25 = vector.load %arg8[%c0_17, %c0_18] : memref<1x64xf32, #tpu.memory_space<vmem>>, vector<1x64xf32>
    %26 = arith.truncf %25 : vector<1x64xf32> to vector<1x64xbf16>
    %27 = arith.truncf %24 : vector<64x128xf32> to vector<64x128xbf16>
    %cst_19 = arith.constant dense<0.000000e+00> : vector<1x128xf32>
    %28 = tpu.matmul %26, %27, %cst_19 {dimension_numbers = #tpu.dot_dimension_numbers<[1], [0], [0], [1], [0, 0, 1, 1], [], []>} : vector<1x64xbf16>, vector<64x128xbf16>, vector<1x128xf32> -> vector<1x128xf32>
    %c0_20 = arith.constant 0 : index
    %c0_21 = arith.constant 0 : index
    %29 = vector.load %arg9[%c0_20, %c0_21] : memref<1x1xf32, #tpu.memory_space<vmem>>, vector<1x1xf32>
    %30 = vector.broadcast %29 : vector<1x1xf32> to vector<1x128xf32>
    %31 = arith.addf %28, %30 : vector<1x128xf32>
    %c0_22 = arith.constant 0 : index
    %c0_23 = arith.constant 0 : index
    %32 = vector.load %arg10[%c0_22, %c0_23] : memref<1x128xf32, #tpu.memory_space<vmem>>, vector<1x128xf32>
    tpu.vector_store %arg10[%c0_22, %c0_23], %31 {strides = array<i32>} : memref<1x128xf32, #tpu.memory_space<vmem>>, vector<1x128xf32>,
    return
  }
  func.func @transform_0(%arg0: i32) -> (i32, i32) {
    %c0_i32 = arith.constant 0 : i32
    %c0_i32_0 = arith.constant 0 : i32
    return %c0_i32, %arg0 : i32, i32
  }
  func.func @transform_1(%arg0: i32) -> (i32, i32) {
    %c0_i32 = arith.constant 0 : i32
    %c0_i32_0 = arith.constant 0 : i32
    return %c0_i32, %arg0 : i32, i32
  }
  func.func @transform_2(%arg0: i32) -> (i32, i32) {
    %c0_i32 = arith.constant 0 : i32
    %c0_i32_0 = arith.constant 0 : i32
    %c0_i32_1 = arith.constant 0 : i32
    return %c0_i32, %c0_i32_0 : i32, i32
  }
  func.func @transform_3(%arg0: i32) -> (i32, i32) {
    %c0_i32 = arith.constant 0 : i32
    %c0_i32_0 = arith.constant 0 : i32
    %c0_i32_1 = arith.constant 0 : i32
    return %c0_i32, %c0_i32_0 : i32, i32
  }
  func.func @transform_4(%arg0: i32) -> (i32, i32) {
    %c0_i32 = arith.constant 0 : i32
    %c0_i32_0 = arith.constant 0 : i32
    %c0_i32_1 = arith.constant 0 : i32
    return %c0_i32, %c0_i32_0 : i32, i32
  }
  func.func @transform_5(%arg0: i32) -> (i32, i32) {
    %c0_i32 = arith.constant 0 : i32
    %c0_i32_0 = arith.constant 0 : i32
    %c0_i32_1 = arith.constant 0 : i32
    return %c0_i32, %c0_i32_0 : i32, i32
  }
  func.func @transform_6(%arg0: i32) -> (i32, i32) {
    %c0_i32 = arith.constant 0 : i32
    %c0_i32_0 = arith.constant 0 : i32
    %c0_i32_1 = arith.constant 0 : i32
    return %c0_i32, %c0_i32_0 : i32, i32
  }
  func.func @transform_7(%arg0: i32) -> (i32, i32) {
    %c0_i32 = arith.constant 0 : i32
    %c0_i32_0 = arith.constant 0 : i32
    %c0_i32_1 = arith.constant 0 : i32
    return %c0_i32, %c0_i32_0 : i32, i32
  }
  func.func @transform_8(%arg0: i32) -> (i32, i32) {
    %c0_i32 = arith.constant 0 : i32
    %c0_i32_0 = arith.constant 0 : i32
    %c0_i32_1 = arith.constant 0 : i32
    return %c0_i32, %c0_i32_0 : i32, i32
  }
  func.func @transform_9(%arg0: i32) -> (i32, i32) {
    %c0_i32 = arith.constant 0 : i32
    %c0_i32_0 = arith.constant 0 : i32
    return %c0_i32, %arg0 : i32, i32
  }
}

</mosaic_0001>

<bundles_post_ra>
// kernel: tpu_custom_call.1
= control target key start
LH: loop header
LB: loop body
LE: loop exit
PB: predicated region body
PF: predicated region fallthrough
CT: control target
= control target key end

     0   :  { %s632_s0 = inlined_call_operand.vmem [shape: f32[12,128], index: 0, kind: input, shape index: {}]   ;;  %s633_s1 = inlined_call_operand.vmem [shape: f32[4,128], index: 1, kind: input, shape index: {}]   ;;  %s634_s2 = inlined_call_operand.vmem [shape: f32[64,12], index: 2, kind: input, shape index: {}]   ;;  %s635_s3 = inlined_call_operand.vmem [shape: f32[64,4], index: 3, kind: input, shape index: {}]   ;;  %s636_s4 = inlined_call_operand.vmem [shape: f32[64,1], index: 4, kind: input, shape index: {}]   ;;  %s637_s5 = inlined_call_operand.vmem [shape: f32[64,64], index: 5, kind: input, shape index: {}]   ;;  %s638_s6 = inlined_call_operand.vmem [shape: f32[64,1], index: 6, kind: input, shape index: {}]   ;;  %s639_s7 = inlined_call_operand.vmem [shape: f32[1,64], index: 7, kind: input, shape index: {}]   ;;  %s640_s8 = inlined_call_operand.<no memory space> [shape: f32[1,1], index: 8, kind: input, shape index: {}]   ;;  %s641_s9 = inlined_call_operand.hbm [shape: f32[1,128], index: 9, kind: output, shape index: {}]  }
   0x1   :  { %v14_v0 = vstv %s640_s8 }
   0x2   :  { %15 = vst [vmem:[#allocation2] sm:$0x1] %v14_v0 }
   0x3   :  { %v163_v1 = vld [vmem:[%s636_s4 + $0x30] sm:$0xff]  ;;  %v39_v2 = vld [vmem:[%s633_s1] sm:$0xf]  ;;  %vm78_vm0 = vcmask 1041408   ;;  %v429_v4 = vmov 0   ;;  %vm124_vm1 = vcmask 1045504  }
   0x4   :  { %v36_v3 = vld [vmem:[%s632_s0] sm:$0xff]  ;;  %400 = vset.pattern.permute.xlu0 %v429_v4  ;;  %v40_v5 = vpack.c.bf16 %v39_v2, %v39_v2  ;;  %v37_v6 = vld [vmem:[%s632_s0 + $0x8] sm:$0xf]  ;;  %401 = vset.pattern.permute.xlu1 %v429_v4  ;;  %vm65_vm2 = vcmask 31744   ;;  %vm111_vm3 = vcmask 97280   ;;  %v164_v17 = vld [vmem:[%s636_s4 + $0x38] sm:$0xff] }
   0x5   :  { %v53_v7 = vld [vmem:[%s635_s3] sm:$0xff]  ;;  %v54_v8 = vld [vmem:[%s635_s3 + $0x8] sm:$0xff]  ;;  %197 = vperm.xlu0 %400, %v163_v1   ;;  %v38_v9 = vpack.c.bf16 %v37_v6, %v36_v3  ;;  %402 = vset.pattern.permute.xlu2 %v429_v4 }
   0x6   :  { %v41_v10 = vld [vmem:[%s634_s2] sm:$0xff]  ;;  %v42_v11 = vld [vmem:[%s634_s2 + $0x8] sm:$0xff]  ;;  %v80_v12 = vsel %vm78_vm0, %v40_v5, 0  ;;  %v61_v13 = vpack.c.bf16 %v54_v8, %v53_v7 }
   0x7   :  { %v161_v14 = vld [vmem:[%s636_s4 + $0x20] sm:$0xff]  ;;  %89 = vmatpush.bf16.msra.mxu0 %v80_v12  ;;  %v126_v15 = vsel %vm124_vm1, %v38_v9, 0  ;;  %v49_v16 = vpack.c.bf16 %v42_v11, %v41_v10 }
   0x8   :  { %187 = vperm.xlu1 %401, %v161_v14   ;;  %135 = vmatpush.bf16.msra.mxu1 %v126_v15 }
   0xa   :  { %381 = vmatmul.msk.bf16.vlgmr.msra.gmra.mxu0 %vm65_vm2, %v61_v13 }
   0xb   :  { %16 = vsyncpa [#allocation4], 0  ;;  %385 = vmatmul.msk.bf16.vlgmr.msra.gmra.mxu1 %vm111_vm3, %v49_v16  ;;  %v162_v18 = vld [vmem:[%s636_s4 + $0x28] sm:$0xff]  ;;  %v157_v19 = vld [vmem:[%s636_s4] sm:$0xff]  ;;  %vm285_vm4 = vcmask 523264   ;;  %s430_s20 = smov [#allocation3]  }
   0xc   :  { %v55_v20 = vld [vmem:[%s635_s3 + $0x10] sm:$0xff]  ;;  %v56_v21 = vld [vmem:[%s635_s3 + $0x18] sm:$0xff]  ;;  %v158_v24 = vld [vmem:[%s636_s4 + $0x8] sm:$0xff]  ;;  %s370_s21 = sshll.u32 %s430_s20, 4  ;;  %s372_s23 = sshll.u32 %s641_s9, 4  ;;  %s371_s21 = int_to_ptr.vmem [resolvable:$true] %s370_s21  ;;  %s373_s23 = int_to_ptr.hbm [resolvable:$true] %s372_s23 }
   0xd   :  { %202 = vperm.xlu0 %400, %v164_v17   ;;  %v43_v22 = vld [vmem:[%s634_s2 + $0x10] sm:$0xff]  ;;  %v44_v23 = vld [vmem:[%s634_s2 + $0x18] sm:$0xff]  ;;  %v62_v25 = vpack.c.bf16 %v56_v21, %v55_v20  ;;  %v241_v29 = vld [vmem:[%s638_s6 + $0x20] sm:$0xff] }
   0xe   :  { %v50_v26 = vpack.c.bf16 %v44_v23, %v43_v22  ;;  %v244_v27 = vld [vmem:[%s638_s6 + $0x38] sm:$0xff]  ;;  %v159_v28 = vld [vmem:[%s636_s4 + $0x10] sm:$0xff]  ;;  %v57_v32 = vld [vmem:[%s635_s3 + $0x20] sm:$0xff] }
   0xf   :  { %177 = vperm.xlu2 %402, %v159_v28   ;;  %v160_v30 = vld [vmem:[%s636_s4 + $0x18] sm:$0xff]  ;;  %v239_v31 = vld [vmem:[%s638_s6 + $0x10] sm:$0xff]  ;;  %v58_v33 = vld [vmem:[%s635_s3 + $0x28] sm:$0xff] }
  0x10   :  { %192 = vperm.xlu1 %401, %v162_v18   ;;  %v45_v34 = vld [vmem:[%s634_s2 + $0x20] sm:$0xff]  ;;  %v46_v35 = vld [vmem:[%s634_s2 + $0x28] sm:$0xff]  ;;  %v240_v36 = vld [vmem:[%s638_s6 + $0x18] sm:$0xff]  ;;  %v63_v37 = vpack.c.bf16 %v58_v33, %v57_v32 }
  0x11   :  { %v51_v38 = vpack.c.bf16 %v46_v35, %v45_v34  ;;  %v243_v39 = vld [vmem:[%s638_s6 + $0x30] sm:$0xff]  ;;  %v238_v40 = vld [vmem:[%s638_s6 + $0x8] sm:$0xff]  ;;  %v341_v41 = vld [vmem:[#allocation2] sm:$0x1] }
  0x12   :  { %v242_v42 = vld [vmem:[%s638_s6 + $0x28] sm:$0xff]  ;;  %v59_v43 = vld [vmem:[%s635_s3 + $0x30] sm:$0xff]  ;;  %v60_v44 = vld [vmem:[%s635_s3 + $0x38] sm:$0xff] }
  0x13   :  { %v47_v45 = vld [vmem:[%s634_s2 + $0x30] sm:$0xff]  ;;  %v48_v46 = vld [vmem:[%s634_s2 + $0x38] sm:$0xff]  ;;  %v64_v47 = vpack.c.bf16 %v60_v44, %v59_v43  ;;  %v237_v49 = vld [vmem:[%s638_s6] sm:$0xff] }
  0x14   :  { %v52_v48 = vpack.c.bf16 %v48_v46, %v47_v45  ;;  %v223_v44 = vld [vmem:[%s637_s5 + $0x10] sm:$0xff]  ;;  %v224_v45 = vld [vmem:[%s637_s5 + $0x18] sm:$0xff] }
  0x15   :  { %167 = vperm.xlu0 %400, %v157_v19   ;;  %v230_v46 = vpack.c.bf16 %v224_v45, %v223_v44 }
  0x17   :  { %182 = vperm.xlu2 %402, %v160_v30  }
  0x18   :  { %172 = vperm.xlu1 %401, %v158_v24  }
  0x1a   :  { %382 = vmatmul.msk.bf16.gmra.mxu0 %vm65_vm2, %v62_v25 }
  0x1b   :  { %386 = vmatmul.msk.bf16.gmra.mxu1 %vm111_vm3, %v50_v26 }
  0x1d   :  { %282 = vperm.xlu0 %400, %v244_v27  }
  0x1f   :  { %277 = vperm.xlu2 %402, %v243_v39   ;;  %v227_v39 = vld [vmem:[%s637_s5 + $0x30] sm:$0xff] }
  0x20   :  { %267 = vperm.xlu1 %401, %v241_v29  }
  0x25   :  { %257 = vperm.xlu0 %400, %v239_v31  }
  0x27   :  { %272 = vperm.xlu2 %402, %v242_v42  }
  0x28   :  { %262 = vperm.xlu1 %401, %v240_v36   ;;  %v221_v36 = vld [vmem:[%s637_s5] sm:$0xff] }
  0x2a   :  { %383 = vmatmul.msk.bf16.gmra.mxu0 %vm65_vm2, %v63_v37 }
  0x2b   :  { %387 = vmatmul.msk.bf16.gmra.mxu1 %vm111_vm3, %v51_v38  ;;  %v222_v38 = vld [vmem:[%s637_s5 + $0x8] sm:$0xff] }
  0x2c   :  { %v229_v42 = vpack.c.bf16 %v222_v38, %v221_v36 }
  0x2d   :  { %252 = vperm.xlu0 %400, %v238_v40   ;;  %v228_v40 = vld [vmem:[%s637_s5 + $0x38] sm:$0xff] }
  0x2e   :  { %v232_v43 = vpack.c.bf16 %v228_v40, %v227_v39 }
  0x2f   :  { %247 = vperm.xlu2 %402, %v237_v49  }
  0x30   :  { %344 = vperm.xlu1 %401, %v341_v41  }
  0x3a   :  { %384 = vmatmul.msk.bf16.gmra.mxu0 %vm65_vm2, %v64_v47  ;;  %v225_v47 = vld [vmem:[%s637_s5 + $0x20] sm:$0xff] }
  0x3b   :  { %388 = vmatmul.msk.bf16.gmra.mxu1 %vm111_vm3, %v52_v48  ;;  %v226_v48 = vld [vmem:[%s637_s5 + $0x28] sm:$0xff] }
  0x3c   :  { %v231_v49 = vpack.c.bf16 %v226_v48, %v225_v47 }
  0x69   :  { %v178_v3 = vpop.permute.xlu2 %177 }
  0x71   :  { %v183_v16 = vpop.permute.xlu2 %182 }
  0x77   :  { %v198_v0 = vpop.permute.xlu0 %197 }
  0x7a   :  { %v188_v63 = vpop.permute.xlu1 %187 }
  0x7f   :  { %v203_v8 = vpop.permute.xlu0 %202 }
  0x82   :  { %v193_v5 = vpop.permute.xlu1 %192 }
  0x87   :  { %v91_v50 = vpop.f32.mrf.mxu0  ;;  %v168_v28 = vpop.permute.xlu0 %167 }
  0x88   :  { %v137_v51 = vpop.f32.mrf.mxu1 }
  0x89   :  { %v138_v52 = vadd.f32 %v137_v51, %v91_v50 }
  0x8a   :  { %v173_v25 = vpop.permute.xlu1 %172 }
  0x8b   :  { %v205_v32 = vadd.f32 %v168_v28, %v138_v52  ;;  %v278_v52 = vpop.permute.xlu2 %277 }
  0x8d   :  { %v213_v37 = vmax.f32 %v205_v32, 0.0 }
  0x8f   :  { %v93_v53 = vpop.f32.mrf.mxu0 }
  0x90   :  { %v139_v54 = vpop.f32.mrf.mxu1 }
  0x91   :  { %v140_v21 = vadd.f32 %v139_v54, %v93_v53  ;;  %v283_v53 = vpop.permute.xlu0 %282 }
  0x93   :  { %v206_v29 = vadd.f32 %v173_v25, %v140_v21  ;;  %v335_v21 = vld [vmem:[%s639_s7] sm:$0x1] }
  0x95   :  { %v214_v34 = vmax.f32 %v206_v29, 0.0 }
  0x97   :  { %v96_v55 = vpop.f32.mrf.mxu0  ;;  %v233_v41 = vpack.c.bf16 %v214_v34, %v213_v37 }
  0x98   :  { %v142_v56 = vpop.f32.mrf.mxu1 }
  0x99   :  { %v143_v17 = vadd.f32 %v142_v56, %v96_v55 }
  0x9b   :  { %v207_v26 = vadd.f32 %v178_v3, %v143_v17 }
  0x9d   :  { %v215_v33 = vmax.f32 %v207_v26, 0.0 }
  0x9f   :  { %v98_v57 = vpop.f32.mrf.mxu0 }
  0xa0   :  { %v144_v58 = vpop.f32.mrf.mxu1 }
  0xa1   :  { %v145_v13 = vadd.f32 %v144_v58, %v98_v57 }
  0xa3   :  { %v208_v22 = vadd.f32 %v183_v16, %v145_v13 }
  0xa5   :  { %v216_v30 = vmax.f32 %v208_v22, 0.0 }
  0xa7   :  { %v101_v59 = vpop.f32.mrf.mxu0  ;;  %v234_v35 = vpack.c.bf16 %v216_v30, %v215_v33 }
  0xa8   :  { %v147_v60 = vpop.f32.mrf.mxu1 }
  0xa9   :  { %v148_v10 = vadd.f32 %v147_v60, %v101_v59 }
  0xab   :  { %v209_v18 = vadd.f32 %v188_v63, %v148_v10  ;;  %v268_v63 = vpop.permute.xlu1 %267 }
  0xad   :  { %v217_v27 = vmax.f32 %v209_v18, 0.0 }
  0xaf   :  { %v103_v61 = vpop.f32.mrf.mxu0 }
  0xb0   :  { %v149_v62 = vpop.f32.mrf.mxu1 }
  0xb1   :  { %v150_v6 = vadd.f32 %v149_v62, %v103_v61 }
  0xb3   :  { %v210_v14 = vadd.f32 %v193_v5, %v150_v6 }
  0xb5   :  { %v218_v23 = vmax.f32 %v210_v14, 0.0 }
  0xb7   :  { %v106_v1 = vpop.f32.mrf.mxu0  ;;  %v235_v31 = vpack.c.bf16 %v218_v23, %v217_v27  ;;  %v336_v23 = vpack.c.bf16 %v335_v21, %v335_v21 }
  0xb8   :  { %v152_v2 = vpop.f32.mrf.mxu1 }
  0xb9   :  { %v153_v4 = vadd.f32 %v152_v2, %v106_v1  ;;  %v258_v1 = vpop.permute.xlu0 %257  ;;  %v273_v2 = vpop.permute.xlu2 %272 }
  0xbb   :  { %v211_v11 = vadd.f32 %v198_v0, %v153_v4  ;;  %v263_v4 = vpop.permute.xlu1 %262 }
  0xbd   :  { %v219_v19 = vmax.f32 %v211_v11, 0.0 }
  0xbf   :  { %v108_v7 = vpop.f32.mrf.mxu0 }
  0xc0   :  { %v154_v9 = vpop.f32.mrf.mxu1 }
  0xc1   :  { %v155_v12 = vadd.f32 %v154_v9, %v108_v7  ;;  %v253_v11 = vpop.permute.xlu0 %252 }
  0xc3   :  { %v212_v15 = vadd.f32 %v203_v8, %v155_v12 }
  0xc5   :  { %v220_v20 = vmax.f32 %v212_v15, 0.0  ;;  %v248_v15 = vpop.permute.xlu2 %247 }
  0xc7   :  { %v236_v24 = vpack.c.bf16 %v220_v20, %v219_v19 }
  0xc9   :  { %302 = vmatpush.bf16.msra.mxu2 %v236_v24  ;;  %394 = vmatpush.bf16.msra.mxu3 %v236_v24  ;;  %v345_v24 = vpop.permute.xlu1 %344 }
  0xca   :  { %v347_v25 = vperm.slane %v345_v24, 0 }
  0xcd   :  { %303 = vmatpush.bf16.msra.mxu2 %v235_v31  ;;  %395 = vmatpush.bf16.msra.mxu3 %v235_v31 }
  0xd1   :  { %304 = vmatpush.bf16.msra.mxu2 %v234_v35  ;;  %396 = vmatpush.bf16.msra.mxu3 %v234_v35 }
  0xd5   :  { %305 = vmatpush.bf16.msra.mxu2 %v233_v41  ;;  %397 = vmatpush.bf16.msra.mxu3 %v233_v41 }
  0xd8   :  { %389 = vmatmul.msk.bf16.vlgmr.msra.gmra.mxu2 %vm285_vm4, %v229_v42  ;;  %392 = vmatmul.msk.bf16.vlgmr.msra.gmra.mxu3 %vm285_vm4, %v232_v43 }
  0xe8   :  { %390 = vmatmul.msk.bf16.gmra.mxu2 %vm285_vm4, %v230_v46 }
  0xf8   :  { %391 = vmatmul.msk.bf16.gmra.mxu2 %vm285_vm4, %v231_v49 }
 0x15b   :  { %v307_v50 = vpop.f32.mrf.mxu2  ;;  %v322_v51 = vpop.f32.mrf.mxu3 }
 0x15c   :  { %v323_v54 = vadd.f32 %v322_v51, %v278_v52  ;;  %v308_v16 = vadd.f32 %v307_v50, %v248_v15 }
 0x15e   :  { %v333_v58 = vmax.f32 %v323_v54, 0.0  ;;  %v327_v20 = vmax.f32 %v308_v16, 0.0 }
 0x163   :  { %v309_v55 = vpop.f32.mrf.mxu2  ;;  %v324_v56 = vpop.f32.mrf.mxu3 }
 0x164   :  { %v325_v57 = vadd.f32 %v324_v56, %v283_v53  ;;  %v310_v12 = vadd.f32 %v309_v55, %v253_v11 }
 0x166   :  { %v334_v59 = vmax.f32 %v325_v57, 0.0  ;;  %v328_v18 = vmax.f32 %v310_v12, 0.0 }
 0x168   :  { %v340_v60 = vpack.c.bf16 %v334_v59, %v333_v58  ;;  %v337_v22 = vpack.c.bf16 %v328_v18, %v327_v20 }
 0x16a   :  { %355 = vmatpush.bf16.msrb.mxu3 %v340_v60 }
 0x16b   :  { %v312_v61 = vpop.f32.mrf.mxu2 }
 0x16c   :  { %v313_v8 = vadd.f32 %v312_v61, %v258_v1 }
 0x16e   :  { %v329_v17 = vmax.f32 %v313_v8, 0.0 }
 0x173   :  { %v314_v62 = vpop.f32.mrf.mxu2 }
 0x174   :  { %v315_v6 = vadd.f32 %v314_v62, %v263_v4 }
 0x176   :  { %v330_v13 = vmax.f32 %v315_v6, 0.0 }
 0x178   :  { %v338_v19 = vpack.c.bf16 %v330_v13, %v329_v17 }
 0x17b   :  { %v317_v0 = vpop.f32.mrf.mxu2 }
 0x17c   :  { %v318_v3 = vadd.f32 %v317_v0, %v268_v63 }
 0x17e   :  { %v331_v9 = vmax.f32 %v318_v3, 0.0 }
 0x183   :  { %v319_v5 = vpop.f32.mrf.mxu2 }
 0x184   :  { %v320_v7 = vadd.f32 %v319_v5, %v273_v2 }
 0x186   :  { %v332_v10 = vmax.f32 %v320_v7, 0.0 }
 0x188   :  { %v339_v14 = vpack.c.bf16 %v332_v10, %v331_v9 }
 0x18a   :  { %356 = vmatpush.bf16.msrb.mxu3 %v339_v14 }
 0x18e   :  { %357 = vmatpush.bf16.msrb.mxu3 %v338_v19 }
 0x192   :  { %358 = vmatpush.bf16.msrb.mxu3 %v337_v22 }
 0x195   :  { %393 = vmatmul.msk.bf16.vlgmr.msrb.gmra.mxu3 %vm285_vm4, %v336_v23 }
 0x218   :  { %v360_v26 = vpop.f32.mrf.mxu3 }
 0x219   :  { %v361_v27 = vadd.f32 %v360_v26, %v347_v25 }
 0x21b   :  { %364 = vst [vmem:[#allocation3] sm:$0x1] %v361_v27 }
 0x21c   :  { %375 = dma.vmem_to_hbm [thread:$0]  %s371_s21, 16, %s373_s23, [#allocation4]  }
 0x220   :  { %v362_v28 = vpop.f32.mrf.mxu3 }
 0x221   :  { %427 = dma.done.wait [#allocation4], 16  }
 0x222   :  { %428 = vsyncadd [#allocation4], 4294967280 }
 0x223   :  { %380 = vsyncpa [#allocation4], 1 }

</bundles_post_ra>
